<compile_context>
chip_gen: v6e
topology: v6e:2x2x1
jax: 0.10.0
libtpu: 0.0.40
codegen_flags: <defaults>
</compile_context>

<pallas_src>
import functools
import math

import jax
import jax.numpy as jnp
from jax.experimental import pallas as pl
from jax.experimental.pallas import tpu as pltpu


def _round_up(x, m):
    return ((x + m - 1) // m) * m


def metanet_kernel(*refs, num_onehot_classes, has_logit_mask):
    if has_logit_mask:
        (hx_ref, y_ref, w1t_ref, clsp_ref, b1_ref, w2_ref, b2_ref, w3_ref,
         mask_ref, out_ref) = refs
    else:
        (hx_ref, y_ref, w1t_ref, clsp_ref, b1_ref, w2_ref, b2_ref, w3_ref,
         out_ref) = refs
        mask_ref = None

    # ----- Layer 1: hx @ W1_top + one_hot(y) @ cls_proj + b1, tanh ---------
    # hx is already bf16 (cast in the wrapper) -> straight to the MXU.
    h = jnp.dot(hx_ref[...], w1t_ref[...], preferred_element_type=jnp.float32)

    # Class-embedding contribution: select cls_proj[y] via a one-hot matmul on
    # the MXU (avoids an XLU gather; only the int32 label is streamed).
    y_col = y_ref[...]                                        # (tb, 1) int32
    cls_iota = jax.lax.broadcasted_iota(
        jnp.int32, (y_col.shape[0], num_onehot_classes), 1)
    onehot = (cls_iota == y_col).astype(clsp_ref.dtype)       # (tb, ncls_oh)
    h += jnp.dot(onehot, clsp_ref[...], preferred_element_type=jnp.float32)
    h = jnp.tanh(h + b1_ref[...])

    # ----- Layer 2: Linear + Tanh ------------------------------------------
    h = jnp.dot(h.astype(w2_ref.dtype), w2_ref[...],
                preferred_element_type=jnp.float32)
    h = jnp.tanh(h + b2_ref[...])

    # ----- Layer 3: Linear (no bias, tie=False); class axis lane-padded -----
    logit = jnp.dot(h.astype(w3_ref.dtype), w3_ref[...],
                    preferred_element_type=jnp.float32)
    if has_logit_mask:
        # Precomputed (1, ncp) additive mask: 0 for real classes, -1e30 for
        # lane padding, so padded columns carry zero softmax mass.
        logit = logit + mask_ref[...]

    # Numerically stable softmax, exact normalisation.
    m = jnp.max(logit, axis=-1, keepdims=True)
    e = jnp.exp(logit - m)
    inv = 1.0 / jnp.sum(e, axis=-1, keepdims=True)
    out_ref[...] = (e * inv).astype(out_ref.dtype)


def metanet_forward(hx, y, params, *, batch_tile=512, out_dtype=jnp.float32):
    """MetaNet forward. hx: (bs, hdim) f32, y: (bs,) int32 class ids."""
    cls_emb = params["cls_emb"]   # (num_classes, cls_emb_dim) bf16
    w1 = params["w1"]             # (hdim + cls_emb_dim, hdim) bf16
    b1 = params["b1"]             # (1, hdim) f32
    w2 = params["w2"]             # (hdim, hdim) bf16
    b2 = params["b2"]             # (1, hdim) f32
    w3 = params["w3"]             # (hdim, num_classes) bf16

    bs, hdim = hx.shape
    num_classes = w3.shape[1]

    # Split W1: top rows multiply hx, bottom rows multiply the class embedding.
    w1_top = w1[:hdim]                          # (hdim, hdim) bf16
    w1_bot = w1[hdim:]                          # (cls_emb_dim, hdim) bf16
    # cls_proj[c] = cls_emb[c] @ W1_bot  -> VMEM-resident table; row selection
    # is done in-kernel with one_hot(y) @ cls_proj.
    cls_proj = jnp.dot(cls_emb.astype(jnp.float32), w1_bot.astype(jnp.float32))
    ncls_oh = _round_up(max(num_classes, 1), 16)      # K dim of one-hot matmul
    cls_proj = jnp.pad(
        cls_proj, ((0, ncls_oh - num_classes), (0, 0))).astype(jnp.bfloat16)

    # Lane-dense class axis (multiple of 128) for W3 and the output store.
    ncp = _round_up(max(num_classes, 1), 128)
    w3_pad = jnp.pad(w3, ((0, 0), (0, ncp - num_classes)))
    has_logit_mask = (ncp != num_classes)
    if has_logit_mask:
        logit_mask = jnp.where(jnp.arange(ncp) < num_classes, 0.0,
                               -1e30).astype(jnp.float32).reshape(1, ncp)

    # Batch tiling: multiples of 16 sublanes (bf16 hx). Pick the tile so that
    # round_up(bs, tb) wastes at most ~16 rows per tile instead of padding all
    # the way to batch_tile.
    bs16 = _round_up(max(bs, 1), 16)
    tb_cap = max(16, (batch_tile // 16) * 16)
    n_tiles = pl.cdiv(bs16, tb_cap)
    tb = _round_up(pl.cdiv(bs16, n_tiles), 16)
    padded_bs = n_tiles * tb

    hx_p = jnp.pad(hx.astype(jnp.bfloat16), ((0, padded_bs - bs), (0, 0)))
    y_p = jnp.pad(y.astype(jnp.int32), (0, padded_bs - bs)).reshape(padded_bs, 1)

    args = [hx_p, y_p, w1_top, cls_proj, b1, w2, b2, w3_pad]
    if has_logit_mask:
        args.append(logit_mask)

    # VMEM limit: use most of the chip's VMEM (v5e/v6e: 128 MiB -> 100 MiB cap;
    # v7x: 64 MiB per TC -> ~57 MiB).
    try:
        vmem_cap = int(pltpu.get_tpu_info().vmem_capacity_bytes)
    except Exception:
        vmem_cap = 64 << 20
    vmem_limit = min(100 << 20, (vmem_cap * 9) // 10)

    kernel_fn = functools.partial(metanet_kernel,
                                  num_onehot_classes=ncls_oh,
                                  has_logit_mask=has_logit_mask)

    def _run(single_buffer_weights):
        # Constant-index (grid-invariant) inputs: single-buffer them when the
        # JAX version supports pipeline_mode (double-buffering a never-changing
        # block only doubles its VMEM footprint).
        if single_buffer_weights:
            kw = dict(pipeline_mode=pl.Buffered(1))
        else:
            kw = {}

        def const2d(shape):
            return pl.BlockSpec(shape, lambda i: (0, 0), **kw)

        in_specs = [
            pl.BlockSpec((tb, hdim), lambda i: (i, 0)),   # hx tile (bf16)
            pl.BlockSpec((tb, 1), lambda i: (i, 0)),      # y labels (int32)
            const2d((hdim, hdim)),                        # W1_top (resident)
            const2d((ncls_oh, hdim)),                     # cls_proj (resident)
            const2d((1, hdim)),                           # b1
            const2d((hdim, hdim)),                        # W2
            const2d((1, hdim)),                           # b2
            const2d((hdim, ncp)),                         # W3 (lane-padded)
        ]
        if has_logit_mask:
            in_specs.append(const2d((1, ncp)))            # additive logit mask

        return pl.pallas_call(
            kernel_fn,
            out_shape=jax.ShapeDtypeStruct((padded_bs, ncp), out_dtype),
            grid=(padded_bs // tb,),
            in_specs=in_specs,
            out_specs=pl.BlockSpec((tb, ncp), lambda i: (i, 0)),
            compiler_params=pltpu.CompilerParams(
                dimension_semantics=("parallel",),
                vmem_limit_bytes=vmem_limit,
            ),
        )(*args)

    try:
        out = _run(True)
    except Exception:
        # Older JAX without BlockSpec pipeline_mode / Buffered(1): fall back to
        # default double-buffered weight blocks (correctness unchanged).
        out = _run(False)

    # TODO(synk): at production sizes (hdim >= ~2K or a large class vocab) add
    # a second ("arbitrary") grid axis that streams W2 K-tiles / W3 class-tiles
    # with an f32 VMEM accumulator + online softmax so resident weights stay
    # under v7x's 64 MiB per-TC VMEM; unnecessary at these shapes.
    return out[:bs, :num_classes]


def metanet_reference(hx, y, params):
    """Pure-JAX reference (same bf16 weights, f32 math, original structure)."""
    cls_emb = params["cls_emb"].astype(jnp.float32)
    w1 = params["w1"].astype(jnp.float32)
    w2 = params["w2"].astype(jnp.float32)
    w3 = params["w3"].astype(jnp.float32)
    y_emb = jnp.take(cls_emb, y, axis=0)
    hin = jnp.concatenate([hx, y_emb], axis=-1)
    h = jnp.tanh(hin @ w1 + params["b1"])
    h = jnp.tanh(h @ w2 + params["b2"])
    logit = h @ w3
    return jax.nn.softmax(logit, axis=-1)


def init_metanet_params(key, *, num_classes, hdim, cls_emb_dim):
    """Matches MetaNet.init_weights():
    - cls_emb: xavier_uniform; linear weights: xavier_normal; biases zero
      (last layer has no bias since tie=False). Weights stored bf16.
    """
    in_dim = hdim + cls_emb_dim
    k_emb, k1, k2, k3 = jax.random.split(key, 4)

    def xavier_uniform(k, fan_in, fan_out, shape):
        a = math.sqrt(6.0 / (fan_in + fan_out))
        return jax.random.uniform(k, shape, jnp.float32, -a, a)

    def xavier_normal(k, fan_in, fan_out, shape):
        std = math.sqrt(2.0 / (fan_in + fan_out))
        return std * jax.random.normal(k, shape, jnp.float32)

    return {
        "cls_emb": xavier_uniform(k_emb, num_classes, cls_emb_dim,
                                  (num_classes, cls_emb_dim)).astype(jnp.bfloat16),
        # Weights stored (in, out); xavier stats are symmetric in fan_in/out.
        "w1": xavier_normal(k1, in_dim, hdim, (in_dim, hdim)).astype(jnp.bfloat16),
        "b1": jnp.zeros((1, hdim), jnp.float32),
        "w2": xavier_normal(k2, hdim, hdim, (hdim, hdim)).astype(jnp.bfloat16),
        "b2": jnp.zeros((1, hdim), jnp.float32),
        "w3": xavier_normal(k3, hdim, num_classes,
                            (hdim, num_classes)).astype(jnp.bfloat16),
        # TODO(synk): args.sparsemax branch not implemented (default
        # sparsemax=False -> softmax path only).
    }


if __name__ == "__main__":
    # Small shapes consistent with the module's forward (correctness check
    # only — far below MXU granularity, so not a performance benchmark):
    #   hx: (batch, hidden_size), y: (batch,) class ids
    batch = 8
    hdim = 32
    cls_emb_dim = 16
    num_classes = 4

    key = jax.random.PRNGKey(0)
    k_params, k_hx, k_y = jax.random.split(key, 3)

    params = init_metanet_params(
        k_params, num_classes=num_classes, hdim=hdim, cls_emb_dim=cls_emb_dim
    )
    hx = jax.random.normal(k_hx, (batch, hdim), jnp.float32)
    y = jax.random.randint(k_y, (batch,), 0, num_classes, jnp.int32)

    out = metanet_forward(hx, y, params)
    out = jax.block_until_ready(out)

    # Sanity: shape, exact softmax normalisation, agreement with the pure-JAX
    # reference (bf16 weights / bf16 MXU inputs -> generous tolerance).
    assert out.shape == (batch, num_classes)
    assert bool(jnp.allclose(jnp.sum(out, axis=-1), 1.0, atol=1e-3))
    ref = metanet_reference(hx, y, params)
    assert bool(jnp.allclose(out, ref, atol=5e-2))

    print("KERNEL_OK")
</pallas_src>

<mosaic_0001>
module attributes {stable_mosaic.version = 11 : i64} {
  func.func @metanet_kernel(%arg0: i32, %arg1: memref<16x32xbf16, #tpu.memory_space<vmem>>, %arg2: memref<16x1xi32, #tpu.memory_space<vmem>>, %arg3: memref<32x32xbf16, #tpu.memory_space<vmem>>, %arg4: memref<16x32xbf16, #tpu.memory_space<vmem>>, %arg5: memref<1x32xf32, #tpu.memory_space<vmem>>, %arg6: memref<32x32xbf16, #tpu.memory_space<vmem>>, %arg7: memref<1x32xf32, #tpu.memory_space<vmem>>, %arg8: memref<32x128xbf16, #tpu.memory_space<vmem>>, %arg9: memref<1x128xf32, #tpu.memory_space<vmem>>, %arg10: memref<16x128xf32, #tpu.memory_space<vmem>>) attributes {dimension_semantics = [#tpu.dimension_semantics<parallel>], iteration_bounds = array<i64: 1>, scalar_prefetch = 0 : i64, scratch_operands = 0 : i64, tpu.core_type = #tpu.core_type<tc>, window_params = [{transform_indices = @transform_0, window_bounds = array<i64: 16, 32>}, {transform_indices = @transform_1, window_bounds = array<i64: 16, 1>}, {pipeline_mode = #tpu.pipeline_mode<synchronous>, transform_indices = @transform_2, window_bounds = array<i64: 32, 32>}, {pipeline_mode = #tpu.pipeline_mode<synchronous>, transform_indices = @transform_3, window_bounds = array<i64: 16, 32>}, {pipeline_mode = #tpu.pipeline_mode<synchronous>, transform_indices = @transform_4, window_bounds = array<i64: 1, 32>}, {pipeline_mode = #tpu.pipeline_mode<synchronous>, transform_indices = @transform_5, window_bounds = array<i64: 32, 32>}, {pipeline_mode = #tpu.pipeline_mode<synchronous>, transform_indices = @transform_6, window_bounds = array<i64: 1, 32>}, {pipeline_mode = #tpu.pipeline_mode<synchronous>, transform_indices = @transform_7, window_bounds = array<i64: 32, 128>}, {pipeline_mode = #tpu.pipeline_mode<synchronous>, transform_indices = @transform_8, window_bounds = array<i64: 1, 128>}, {transform_indices = @transform_9, window_bounds = array<i64: 16, 128>}]} {
    %c0 = arith.constant 0 : index
    %c0_0 = arith.constant 0 : index
    %0 = vector.load %arg1[%c0, %c0_0] : memref<16x32xbf16, #tpu.memory_space<vmem>>, vector<16x32xbf16>
    %c0_1 = arith.constant 0 : index
    %c0_2 = arith.constant 0 : index
    %1 = vector.load %arg3[%c0_1, %c0_2] : memref<32x32xbf16, #tpu.memory_space<vmem>>, vector<32x32xbf16>
    %cst = arith.constant dense<0.000000e+00> : vector<16x32xf32>
    %2 = tpu.matmul %0, %1, %cst {dimension_numbers = #tpu.dot_dimension_numbers<[1], [0], [0], [1], [0, 0, 1, 1], [], []>} : vector<16x32xbf16>, vector<32x32xbf16>, vector<16x32xf32> -> vector<16x32xf32>
    %c0_3 = arith.constant 0 : index
    %c0_4 = arith.constant 0 : index
    %3 = vector.load %arg2[%c0_3, %c0_4] : memref<16x1xi32, #tpu.memory_space<vmem>>, vector<16x1xi32>
    %4 = tpu.iota {dimensions = array<i32: 1>} : vector<16x16xi32>
    %5 = vector.broadcast %3 : vector<16x1xi32> to vector<16x16xi32>
    %6 = arith.cmpi eq, %4, %5 : vector<16x16xi32>
    %7 = arith.extui %6 : vector<16x16xi1> to vector<16x16xi32>
    %8 = arith.sitofp %7 : vector<16x16xi32> to vector<16x16xf32>
    %9 = arith.truncf %8 : vector<16x16xf32> to vector<16x16xbf16>
    %c0_5 = arith.constant 0 : index
    %c0_6 = arith.constant 0 : index
    %10 = vector.load %arg4[%c0_5, %c0_6] : memref<16x32xbf16, #tpu.memory_space<vmem>>, vector<16x32xbf16>
    %cst_7 = arith.constant dense<0.000000e+00> : vector<16x32xf32>
    %11 = tpu.matmul %9, %10, %cst_7 {dimension_numbers = #tpu.dot_dimension_numbers<[1], [0], [0], [1], [0, 0, 1, 1], [], []>} : vector<16x16xbf16>, vector<16x32xbf16>, vector<16x32xf32> -> vector<16x32xf32>
    %12 = arith.addf %2, %11 : vector<16x32xf32>
    %c0_8 = arith.constant 0 : index
    %c0_9 = arith.constant 0 : index
    %13 = vector.load %arg5[%c0_8, %c0_9] : memref<1x32xf32, #tpu.memory_space<vmem>>, vector<1x32xf32>
    %14 = vector.broadcast %13 : vector<1x32xf32> to vector<16x32xf32>
    %15 = arith.addf %12, %14 : vector<16x32xf32>
    %16 = math.tanh %15 : vector<16x32xf32>
    %17 = arith.truncf %16 : vector<16x32xf32> to vector<16x32xbf16>
    %c0_10 = arith.constant 0 : index
    %c0_11 = arith.constant 0 : index
    %18 = vector.load %arg6[%c0_10, %c0_11] : memref<32x32xbf16, #tpu.memory_space<vmem>>, vector<32x32xbf16>
    %cst_12 = arith.constant dense<0.000000e+00> : vector<16x32xf32>
    %19 = tpu.matmul %17, %18, %cst_12 {dimension_numbers = #tpu.dot_dimension_numbers<[1], [0], [0], [1], [0, 0, 1, 1], [], []>} : vector<16x32xbf16>, vector<32x32xbf16>, vector<16x32xf32> -> vector<16x32xf32>
    %c0_13 = arith.constant 0 : index
    %c0_14 = arith.constant 0 : index
    %20 = vector.load %arg7[%c0_13, %c0_14] : memref<1x32xf32, #tpu.memory_space<vmem>>, vector<1x32xf32>
    %21 = vector.broadcast %20 : vector<1x32xf32> to vector<16x32xf32>
    %22 = arith.addf %19, %21 : vector<16x32xf32>
    %23 = math.tanh %22 : vector<16x32xf32>
    %24 = arith.truncf %23 : vector<16x32xf32> to vector<16x32xbf16>
    %c0_15 = arith.constant 0 : index
    %c0_16 = arith.constant 0 : index
    %25 = vector.load %arg8[%c0_15, %c0_16] : memref<32x128xbf16, #tpu.memory_space<vmem>>, vector<32x128xbf16>
    %cst_17 = arith.constant dense<0.000000e+00> : vector<16x128xf32>
    %26 = tpu.matmul %24, %25, %cst_17 {dimension_numbers = #tpu.dot_dimension_numbers<[1], [0], [0], [1], [0, 0, 1, 1], [], []>} : vector<16x32xbf16>, vector<32x128xbf16>, vector<16x128xf32> -> vector<16x128xf32>
    %c0_18 = arith.constant 0 : index
    %c0_19 = arith.constant 0 : index
    %27 = vector.load %arg9[%c0_18, %c0_19] : memref<1x128xf32, #tpu.memory_space<vmem>>, vector<1x128xf32>
    %28 = vector.broadcast %27 : vector<1x128xf32> to vector<16x128xf32>
    %29 = arith.addf %26, %28 : vector<16x128xf32>
    %cst_20 = arith.constant dense<0xFF800000> : vector<16xf32>
    %30 = vector.multi_reduction <maximumf>, %29, %cst_20 [1] : vector<16x128xf32> to vector<16xf32>
    %31 = vector.shape_cast %30 : vector<16xf32> to vector<16x1xf32>
    %32 = vector.broadcast %31 : vector<16x1xf32> to vector<16x128xf32>
    %33 = arith.subf %29, %32 : vector<16x128xf32>
    %34 = math.exp %33 : vector<16x128xf32>
    %cst_21 = arith.constant dense<0.000000e+00> : vector<16xf32>
    %35 = vector.multi_reduction <add>, %34, %cst_21 [1] : vector<16x128xf32> to vector<16xf32>
    %36 = vector.shape_cast %35 : vector<16xf32> to vector<16x1xf32>
    %cst_22 = arith.constant 1.000000e+00 : f32
    %37 = vector.broadcast %cst_22 : f32 to vector<16x1xf32>
    %38 = arith.divf %37, %36 : vector<16x1xf32>
    %39 = vector.broadcast %38 : vector<16x1xf32> to vector<16x128xf32>
    %40 = arith.mulf %34, %39 : vector<16x128xf32>
    %c0_23 = arith.constant 0 : index
    %c0_24 = arith.constant 0 : index
    %41 = vector.load %arg10[%c0_23, %c0_24] : memref<16x128xf32, #tpu.memory_space<vmem>>, vector<16x128xf32>
    tpu.vector_store %arg10[%c0_23, %c0_24], %40 {strides = array<i32>} : memref<16x128xf32, #tpu.memory_space<vmem>>, vector<16x128xf32>,
    return
  }
  func.func @transform_0(%arg0: i32) -> (i32, i32) {
    %c0_i32 = arith.constant 0 : i32
    %c0_i32_0 = arith.constant 0 : i32
    return %arg0, %c0_i32 : i32, i32
  }
  func.func @transform_1(%arg0: i32) -> (i32, i32) {
    %c0_i32 = arith.constant 0 : i32
    %c0_i32_0 = arith.constant 0 : i32
    return %arg0, %c0_i32 : i32, i32
  }
  func.func @transform_2(%arg0: i32) -> (i32, i32) {
    %c0_i32 = arith.constant 0 : i32
    %c0_i32_0 = arith.constant 0 : i32
    %c0_i32_1 = arith.constant 0 : i32
    return %c0_i32, %c0_i32_0 : i32, i32
  }
  func.func @transform_3(%arg0: i32) -> (i32, i32) {
    %c0_i32 = arith.constant 0 : i32
    %c0_i32_0 = arith.constant 0 : i32
    %c0_i32_1 = arith.constant 0 : i32
    return %c0_i32, %c0_i32_0 : i32, i32
  }
  func.func @transform_4(%arg0: i32) -> (i32, i32) {
    %c0_i32 = arith.constant 0 : i32
    %c0_i32_0 = arith.constant 0 : i32
    %c0_i32_1 = arith.constant 0 : i32
    return %c0_i32, %c0_i32_0 : i32, i32
  }
  func.func @transform_5(%arg0: i32) -> (i32, i32) {
    %c0_i32 = arith.constant 0 : i32
    %c0_i32_0 = arith.constant 0 : i32
    %c0_i32_1 = arith.constant 0 : i32
    return %c0_i32, %c0_i32_0 : i32, i32
  }
  func.func @transform_6(%arg0: i32) -> (i32, i32) {
    %c0_i32 = arith.constant 0 : i32
    %c0_i32_0 = arith.constant 0 : i32
    %c0_i32_1 = arith.constant 0 : i32
    return %c0_i32, %c0_i32_0 : i32, i32
  }
  func.func @transform_7(%arg0: i32) -> (i32, i32) {
    %c0_i32 = arith.constant 0 : i32
    %c0_i32_0 = arith.constant 0 : i32
    %c0_i32_1 = arith.constant 0 : i32
    return %c0_i32, %c0_i32_0 : i32, i32
  }
  func.func @transform_8(%arg0: i32) -> (i32, i32) {
    %c0_i32 = arith.constant 0 : i32
    %c0_i32_0 = arith.constant 0 : i32
    %c0_i32_1 = arith.constant 0 : i32
    return %c0_i32, %c0_i32_0 : i32, i32
  }
  func.func @transform_9(%arg0: i32) -> (i32, i32) {
    %c0_i32 = arith.constant 0 : i32
    %c0_i32_0 = arith.constant 0 : i32
    return %arg0, %c0_i32 : i32, i32
  }
}

module attributes {stable_mosaic.version = 11 : i64} {
  func.func @metanet_kernel(%arg0: i32, %arg1: memref<16x32xbf16, #tpu.memory_space<vmem>>, %arg2: memref<16x1xi32, #tpu.memory_space<vmem>>, %arg3: memref<32x32xbf16, #tpu.memory_space<vmem>>, %arg4: memref<16x32xbf16, #tpu.memory_space<vmem>>, %arg5: memref<1x32xf32, #tpu.memory_space<vmem>>, %arg6: memref<32x32xbf16, #tpu.memory_space<vmem>>, %arg7: memref<1x32xf32, #tpu.memory_space<vmem>>, %arg8: memref<32x128xbf16, #tpu.memory_space<vmem>>, %arg9: memref<1x128xf32, #tpu.memory_space<vmem>>, %arg10: memref<16x128xf32, #tpu.memory_space<vmem>>) attributes {dimension_semantics = [#tpu.dimension_semantics<parallel>], iteration_bounds = array<i64: 1>, scalar_prefetch = 0 : i64, scratch_operands = 0 : i64, tpu.core_type = #tpu.core_type<tc>, window_params = [{transform_indices = @transform_0, window_bounds = array<i64: 16, 32>}, {transform_indices = @transform_1, window_bounds = array<i64: 16, 1>}, {pipeline_mode = #tpu.pipeline_mode<synchronous>, transform_indices = @transform_2, window_bounds = array<i64: 32, 32>}, {pipeline_mode = #tpu.pipeline_mode<synchronous>, transform_indices = @transform_3, window_bounds = array<i64: 16, 32>}, {pipeline_mode = #tpu.pipeline_mode<synchronous>, transform_indices = @transform_4, window_bounds = array<i64: 1, 32>}, {pipeline_mode = #tpu.pipeline_mode<synchronous>, transform_indices = @transform_5, window_bounds = array<i64: 32, 32>}, {pipeline_mode = #tpu.pipeline_mode<synchronous>, transform_indices = @transform_6, window_bounds = array<i64: 1, 32>}, {pipeline_mode = #tpu.pipeline_mode<synchronous>, transform_indices = @transform_7, window_bounds = array<i64: 32, 128>}, {pipeline_mode = #tpu.pipeline_mode<synchronous>, transform_indices = @transform_8, window_bounds = array<i64: 1, 128>}, {transform_indices = @transform_9, window_bounds = array<i64: 16, 128>}]} {
    %c0 = arith.constant 0 : index
    %c0_0 = arith.constant 0 : index
    %0 = vector.load %arg1[%c0, %c0_0] : memref<16x32xbf16, #tpu.memory_space<vmem>>, vector<16x32xbf16>
    %c0_1 = arith.constant 0 : index
    %c0_2 = arith.constant 0 : index
    %1 = vector.load %arg3[%c0_1, %c0_2] : memref<32x32xbf16, #tpu.memory_space<vmem>>, vector<32x32xbf16>
    %cst = arith.constant dense<0.000000e+00> : vector<16x32xf32>
    %2 = tpu.matmul %0, %1, %cst {dimension_numbers = #tpu.dot_dimension_numbers<[1], [0], [0], [1], [0, 0, 1, 1], [], []>} : vector<16x32xbf16>, vector<32x32xbf16>, vector<16x32xf32> -> vector<16x32xf32>
    %c0_3 = arith.constant 0 : index
    %c0_4 = arith.constant 0 : index
    %3 = vector.load %arg2[%c0_3, %c0_4] : memref<16x1xi32, #tpu.memory_space<vmem>>, vector<16x1xi32>
    %4 = tpu.iota {dimensions = array<i32: 1>} : vector<16x16xi32>
    %5 = vector.broadcast %3 : vector<16x1xi32> to vector<16x16xi32>
    %6 = arith.cmpi eq, %4, %5 : vector<16x16xi32>
    %7 = arith.extui %6 : vector<16x16xi1> to vector<16x16xi32>
    %8 = arith.sitofp %7 : vector<16x16xi32> to vector<16x16xf32>
    %9 = arith.truncf %8 : vector<16x16xf32> to vector<16x16xbf16>
    %c0_5 = arith.constant 0 : index
    %c0_6 = arith.constant 0 : index
    %10 = vector.load %arg4[%c0_5, %c0_6] : memref<16x32xbf16, #tpu.memory_space<vmem>>, vector<16x32xbf16>
    %cst_7 = arith.constant dense<0.000000e+00> : vector<16x32xf32>
    %11 = tpu.matmul %9, %10, %cst_7 {dimension_numbers = #tpu.dot_dimension_numbers<[1], [0], [0], [1], [0, 0, 1, 1], [], []>} : vector<16x16xbf16>, vector<16x32xbf16>, vector<16x32xf32> -> vector<16x32xf32>
    %12 = arith.addf %2, %11 : vector<16x32xf32>
    %c0_8 = arith.constant 0 : index
    %c0_9 = arith.constant 0 : index
    %13 = vector.load %arg5[%c0_8, %c0_9] : memref<1x32xf32, #tpu.memory_space<vmem>>, vector<1x32xf32>
    %14 = vector.broadcast %13 : vector<1x32xf32> to vector<16x32xf32>
    %15 = arith.addf %12, %14 : vector<16x32xf32>
    %16 = math.tanh %15 : vector<16x32xf32>
    %17 = arith.truncf %16 : vector<16x32xf32> to vector<16x32xbf16>
    %c0_10 = arith.constant 0 : index
    %c0_11 = arith.constant 0 : index
    %18 = vector.load %arg6[%c0_10, %c0_11] : memref<32x32xbf16, #tpu.memory_space<vmem>>, vector<32x32xbf16>
    %cst_12 = arith.constant dense<0.000000e+00> : vector<16x32xf32>
    %19 = tpu.matmul %17, %18, %cst_12 {dimension_numbers = #tpu.dot_dimension_numbers<[1], [0], [0], [1], [0, 0, 1, 1], [], []>} : vector<16x32xbf16>, vector<32x32xbf16>, vector<16x32xf32> -> vector<16x32xf32>
    %c0_13 = arith.constant 0 : index
    %c0_14 = arith.constant 0 : index
    %20 = vector.load %arg7[%c0_13, %c0_14] : memref<1x32xf32, #tpu.memory_space<vmem>>, vector<1x32xf32>
    %21 = vector.broadcast %20 : vector<1x32xf32> to vector<16x32xf32>
    %22 = arith.addf %19, %21 : vector<16x32xf32>
    %23 = math.tanh %22 : vector<16x32xf32>
    %24 = arith.truncf %23 : vector<16x32xf32> to vector<16x32xbf16>
    %c0_15 = arith.constant 0 : index
    %c0_16 = arith.constant 0 : index
    %25 = vector.load %arg8[%c0_15, %c0_16] : memref<32x128xbf16, #tpu.memory_space<vmem>>, vector<32x128xbf16>
    %cst_17 = arith.constant dense<0.000000e+00> : vector<16x128xf32>
    %26 = tpu.matmul %24, %25, %cst_17 {dimension_numbers = #tpu.dot_dimension_numbers<[1], [0], [0], [1], [0, 0, 1, 1], [], []>} : vector<16x32xbf16>, vector<32x128xbf16>, vector<16x128xf32> -> vector<16x128xf32>
    %c0_18 = arith.constant 0 : index
    %c0_19 = arith.constant 0 : index
    %27 = vector.load %arg9[%c0_18, %c0_19] : memref<1x128xf32, #tpu.memory_space<vmem>>, vector<1x128xf32>
    %28 = vector.broadcast %27 : vector<1x128xf32> to vector<16x128xf32>
    %29 = arith.addf %26, %28 : vector<16x128xf32>
    %cst_20 = arith.constant dense<0xFF800000> : vector<16xf32>
    %30 = vector.multi_reduction <maximumf>, %29, %cst_20 [1] : vector<16x128xf32> to vector<16xf32>
    %31 = vector.shape_cast %30 : vector<16xf32> to vector<16x1xf32>
    %32 = vector.broadcast %31 : vector<16x1xf32> to vector<16x128xf32>
    %33 = arith.subf %29, %32 : vector<16x128xf32>
    %34 = math.exp %33 : vector<16x128xf32>
    %cst_21 = arith.constant dense<0.000000e+00> : vector<16xf32>
    %35 = vector.multi_reduction <add>, %34, %cst_21 [1] : vector<16x128xf32> to vector<16xf32>
    %36 = vector.shape_cast %35 : vector<16xf32> to vector<16x1xf32>
    %cst_22 = arith.constant 1.000000e+00 : f32
    %37 = vector.broadcast %cst_22 : f32 to vector<16x1xf32>
    %38 = arith.divf %37, %36 : vector<16x1xf32>
    %39 = vector.broadcast %38 : vector<16x1xf32> to vector<16x128xf32>
    %40 = arith.mulf %34, %39 : vector<16x128xf32>
    %c0_23 = arith.constant 0 : index
    %c0_24 = arith.constant 0 : index
    %41 = vector.load %arg10[%c0_23, %c0_24] : memref<16x128xf32, #tpu.memory_space<vmem>>, vector<16x128xf32>
    tpu.vector_store %arg10[%c0_23, %c0_24], %40 {strides = array<i32>} : memref<16x128xf32, #tpu.memory_space<vmem>>, vector<16x128xf32>,
    return
  }
  func.func @transform_0(%arg0: i32) -> (i32, i32) {
    %c0_i32 = arith.constant 0 : i32
    %c0_i32_0 = arith.constant 0 : i32
    return %arg0, %c0_i32 : i32, i32
  }
  func.func @transform_1(%arg0: i32) -> (i32, i32) {
    %c0_i32 = arith.constant 0 : i32
    %c0_i32_0 = arith.constant 0 : i32
    return %arg0, %c0_i32 : i32, i32
  }
  func.func @transform_2(%arg0: i32) -> (i32, i32) {
    %c0_i32 = arith.constant 0 : i32
    %c0_i32_0 = arith.constant 0 : i32
    %c0_i32_1 = arith.constant 0 : i32
    return %c0_i32, %c0_i32_0 : i32, i32
  }
  func.func @transform_3(%arg0: i32) -> (i32, i32) {
    %c0_i32 = arith.constant 0 : i32
    %c0_i32_0 = arith.constant 0 : i32
    %c0_i32_1 = arith.constant 0 : i32
    return %c0_i32, %c0_i32_0 : i32, i32
  }
  func.func @transform_4(%arg0: i32) -> (i32, i32) {
    %c0_i32 = arith.constant 0 : i32
    %c0_i32_0 = arith.constant 0 : i32
    %c0_i32_1 = arith.constant 0 : i32
    return %c0_i32, %c0_i32_0 : i32, i32
  }
  func.func @transform_5(%arg0: i32) -> (i32, i32) {
    %c0_i32 = arith.constant 0 : i32
    %c0_i32_0 = arith.constant 0 : i32
    %c0_i32_1 = arith.constant 0 : i32
    return %c0_i32, %c0_i32_0 : i32, i32
  }
  func.func @transform_6(%arg0: i32) -> (i32, i32) {
    %c0_i32 = arith.constant 0 : i32
    %c0_i32_0 = arith.constant 0 : i32
    %c0_i32_1 = arith.constant 0 : i32
    return %c0_i32, %c0_i32_0 : i32, i32
  }
  func.func @transform_7(%arg0: i32) -> (i32, i32) {
    %c0_i32 = arith.constant 0 : i32
    %c0_i32_0 = arith.constant 0 : i32
    %c0_i32_1 = arith.constant 0 : i32
    return %c0_i32, %c0_i32_0 : i32, i32
  }
  func.func @transform_8(%arg0: i32) -> (i32, i32) {
    %c0_i32 = arith.constant 0 : i32
    %c0_i32_0 = arith.constant 0 : i32
    %c0_i32_1 = arith.constant 0 : i32
    return %c0_i32, %c0_i32_0 : i32, i32
  }
  func.func @transform_9(%arg0: i32) -> (i32, i32) {
    %c0_i32 = arith.constant 0 : i32
    %c0_i32_0 = arith.constant 0 : i32
    return %arg0, %c0_i32 : i32, i32
  }
}

</mosaic_0001>

<bundles_post_ra>
// kernel: tpu_custom_call.1
= control target key start
LH: loop header
LB: loop body
LE: loop exit
PB: predicated region body
PF: predicated region fallthrough
CT: control target
= control target key end

     0   :  { %14 = vsyncpa [#allocation3], 0  ;;  %s737_s0 = inlined_call_operand.hbm [shape: bf16[16,32], index: 0, kind: input, shape index: {}]   ;;  %s738_s1 = inlined_call_operand.vmem [shape: s32[16,1], index: 1, kind: input, shape index: {}]   ;;  %s739_s2 = inlined_call_operand.vmem [shape: bf16[32,32], index: 2, kind: input, shape index: {}]   ;;  %s740_s3 = inlined_call_operand.hbm [shape: bf16[16,32], index: 3, kind: input, shape index: {}]   ;;  %s741_s4 = inlined_call_operand.vmem [shape: f32[1,32], index: 4, kind: input, shape index: {}]   ;;  %s742_s5 = inlined_call_operand.hbm [shape: bf16[32,32], index: 5, kind: input, shape index: {}]   ;;  %s743_s6 = inlined_call_operand.vmem [shape: f32[1,32], index: 6, kind: input, shape index: {}]   ;;  %s744_s7 = inlined_call_operand.hbm [shape: bf16[32,128], index: 7, kind: input, shape index: {}]   ;;  %s745_s8 = inlined_call_operand.vmem [shape: f32[1,128], index: 8, kind: input, shape index: {}]   ;;  %s746_s9 = inlined_call_operand.hbm [shape: f32[16,128], index: 9, kind: output, shape index: {}]  }
   0x1   :  { %15 = vsyncpa [#allocation6], 0 }
   0x2   :  { %16 = vsyncpa [#allocation9], 0 }
   0x3   :  { %17 = vsyncpa [#allocation4], 0  ;;  %s620_s30 = smov [#allocation5]   ;;  %s621_s11 = smov [#allocation2]  }
   0x4   :  { %s39_s10 = sshll.u32 %s620_s30, 4  ;;  %s23_s12 = sshll.u32 %s621_s11, 4  ;;  %s40_s10 = int_to_ptr.vmem [resolvable:$true] %s39_s10  ;;  %s24_s12 = int_to_ptr.vmem [resolvable:$true] %s23_s12 }
   0x5   :  { %s520_s13 = scalar_lea.vmem %s40_s10, 128  ;;  %p525_p1 = scmp.lt.s32.totalorder %s40_s10, %s40_s10 }
   0x6   :  { %p521_p0 = scmp.ne.s32.totalorder %s40_s10, %s520_s13  ;;  %p526_p2 = scmp.lt.s32.totalorder %s520_s13, %s520_s13 }
   0x8   :  { %p527_p3 = por %p526_p2, %p525_p1 }
   0xa   :  { %p528_p4 = pnand %p527_p3, %p521_p0 }
   0xc   :  { %531 = shalt.err (!%p528_p4)
}
   0xd   :  { %s622_s14 = smov 64   ;;  %s623_s15 = smov 4  }
   0xe   :  { %45 = dma.hbm_to_vmem [thread:$0]  %s740_s3, 128, %s40_s10, [#allocation6], %s622_s14, %s622_s14, %s623_s15  }
   0xf   :  { %s540_s18 = scalar_lea.vmem %s24_s12, 128  ;;  %p545_p6 = scmp.lt.s32.totalorder %s24_s12, %s24_s12 }
  0x10   :  { %p541_p5 = scmp.ne.s32.totalorder %s24_s12, %s540_s18  ;;  %p546_p7 = scmp.lt.s32.totalorder %s540_s18, %s540_s18 }
  0x12   :  { %p547_p8 = por %p546_p7, %p545_p6 }
  0x14   :  { %p548_p9 = pnand %p547_p8, %p541_p5 }
  0x16   :  { %551 = shalt.err (!%p548_p9)
}
  0x17   :  { %29 = dma.hbm_to_vmem [thread:$0]  %s737_s0, 128, %s24_s12, [#allocation3], %s622_s14, %s622_s14, %s623_s15  }
  0x18   :  { %s624_s21 = smov [#allocation7]   ;;  %s625_s23 = smov [#allocation8]  }
  0x19   :  { %s53_s22 = sshll.u32 %s624_s21, 4  ;;  %s67_s24 = sshll.u32 %s625_s23, 4  ;;  %s54_s22 = int_to_ptr.vmem [resolvable:$true] %s53_s22  ;;  %s68_s24 = int_to_ptr.vmem [resolvable:$true] %s67_s24 }
  0x1a   :  { %s560_s3 = scalar_lea.vmem %s54_s22, 256  ;;  %p565_p11 = scmp.lt.s32.totalorder %s54_s22, %s54_s22 }
  0x1b   :  { %p561_p10 = scmp.ne.s32.totalorder %s54_s22, %s560_s3  ;;  %p566_p12 = scmp.lt.s32.totalorder %s560_s3, %s560_s3 }
  0x1d   :  { %p567_p13 = por %p566_p12, %p565_p11 }
  0x1f   :  { %p568_p0 = pnand %p567_p13, %p561_p10 }
  0x21   :  { %571 = shalt.err (!%p568_p0)
}
  0x22   :  { %59 = dma.hbm_to_vmem [thread:$0]  %s742_s5, 256, %s54_s22, [#allocation6], %s622_s14, %s622_s14, %s623_s15  }
  0x23   :  { %s580_s0 = scalar_lea.vmem %s68_s24, 256  ;;  %p585_p2 = scmp.lt.s32.totalorder %s68_s24, %s68_s24 }
  0x24   :  { %p581_p1 = scmp.ne.s32.totalorder %s68_s24, %s580_s0  ;;  %p586_p3 = scmp.lt.s32.totalorder %s580_s0, %s580_s0 }
  0x26   :  { %p587_p4 = por %p586_p3, %p585_p2 }
  0x28   :  { %p588_p5 = pnand %p587_p4, %p581_p1 }
  0x2a   :  { %591 = shalt.err (!%p588_p5)
}
  0x2b   :  { %73 = dma.hbm_to_vmem [thread:$0]  %s744_s7, 256, %s68_s24, [#allocation9], %s622_s14, %s622_s14, %s623_s15  }
  0x2c   :  { %612 = dma.done.wait [#allocation3], 128  }
  0x2d   :  { %613 = vsyncadd [#allocation3], 4294967168 }
  0x2e   :  { %614 = dma.done.wait [#allocation6], 384  }
  0x2f   :  { %615 = vsyncadd [#allocation6], 4294966912 }
  0x30   :  { %616 = dma.done.wait [#allocation9], 256  }
  0x31   :  { %617 = vsyncadd [#allocation9], 4294967040  ;;  %v626_v0 = vmov 0   ;;  %v627_v1 = vmov 0.0   ;;  %vm628_vm0 = vmmov 0   ;;  %v95_v2 = vld [vmem:[%s738_s1] sm:$0xff]  ;;  %v97_v8 = vlaneseq }
  0x32   :  { %487 = vset.pattern.permute.xlu0 %v626_v0  ;;  %451 = vmatprep.subr.bf16.mxu1 %v627_v1  ;;  %v488_v3 = vld [vmem:[%s739_s2 + $0x8] sm:$0xff]   ;;  %v489_v5 = vld [vmem:[%s739_s2] sm:$0xff]   ;;  %vm182_vm1 = vcmask 261120   ;;  %vm120_vm4 = vcmask 130048   ;;  %v492_v18 = vld [vmem:[#allocation7 + $0x8] sm:$0xff]  }
  0x33   :  { %445 = vmatprep.subr.bf16.mxu0 %v627_v1  ;;  %455 = vmatprep.mubr.msk.bf16.mxu1 %vm628_vm0, %v627_v1  ;;  %v96_v4 = vld [vmem:[%s738_s1 + $0x8] sm:$0xff]  ;;  %v490_v6 = vld [vmem:[#allocation2] sm:$0xff]   ;;  %v98_v9 = vand.u32 127, %v97_v8  ;;  %v493_v20 = vld [vmem:[#allocation7] sm:$0xff]  }
  0x34   :  { %447 = vmatprep.mubr.msk.bf16.mxu0 %vm628_vm0, %v627_v1  ;;  %100 = vperm.xlu0 %487, %v95_v2   ;;  %v491_v7 = vld [vmem:[#allocation5] sm:$0xff]   ;;  %v425_v23 = vld [vmem:[%s741_s4] ss:$0 sm:$0xff] }
  0x35   :  { %452 = vmatpush3.bf16.msra.mxu1 %v488_v3  ;;  %446 = vmatpush3.bf16.msra.mxu0 %v491_v7  ;;  %v494_v33 = vld [vmem:[#allocation8 + $0x8] sm:$0xff]   ;;  %v495_v34 = vld [vmem:[#allocation8] sm:$0xff]  }
  0x36   :  { %453 = vmatprep.subr.bf16.mxu1 %v627_v1  ;;  %459 = vmatprep.subr.bf16.mxu0 %v627_v1  ;;  %v426_v35 = vld [vmem:[%s743_s6] ss:$0 sm:$0xff]  ;;  %s629_s6 = smov [#allocation10]  }
  0x37   :  { %v430_v45 = vld [vmem:[%s745_s8] ss:$0 sm:$0xff]  ;;  %s403_s8 = sshll.u32 %s629_s6, 4  ;;  %s404_s8 = int_to_ptr.vmem [resolvable:$true] %s403_s8 }
  0x38   :  { %103 = vperm.xlu0 %487, %v96_v4   ;;  %s592_s17 = scalar_lea.vmem %s404_s8, 256  ;;  %p597_p7 = scmp.lt.s32.totalorder %s404_s8, %s404_s8 }
  0x39   :  { %454 = vmatpush3.bf16.msra.mxu1 %v489_v5  ;;  %p593_p6 = scmp.ne.s32.totalorder %s404_s8, %s592_s17  ;;  %p598_p8 = scmp.lt.s32.totalorder %s592_s17, %s592_s17 }
  0x3a   :  { %467 = vmatprep.subr.bf16.mxu1 %v627_v1 }
  0x3b   :  { %p599_p9 = por %p598_p8, %p597_p7 }
  0x3c   :  { %456 = vmatmul.mubr.msk.bf16.vlgmr.msra.gmra.mxu1 %vm182_vm1, %v490_v6 }
  0x3d   :  { %471 = vmatprep.mubr.msk.bf16.mxu1 %vm628_vm0, %v627_v1  ;;  %468 = vmatpush3.bf16.msra.mxu1 %v494_v33  ;;  %p600_p10 = pnand %p599_p9, %p593_p6 }
  0x3e   :  { %469 = vmatprep.subr.bf16.mxu1 %v627_v1 }
  0x41   :  { %470 = vmatpush3.bf16.msra.mxu1 %v495_v34 }
  0xaf   :  { %v101_v10 = vpop.permute.xlu0 %100 }
  0xb0   :  { %vm105_vm2 = vcmp.eq.s32.totalorder %v98_v9, %v101_v10 }
  0xb1   :  { %v417_v12 = vsel %vm105_vm2, 1.0, %v627_v1 }
  0xb3   :  { %v104_v11 = vpop.permute.xlu0 %103 }
  0xb4   :  { %vm106_vm3 = vcmp.eq.s32.totalorder %v98_v9, %v104_v11 }
  0xb5   :  { %v418_v13 = vsel %vm106_vm3, 1.0, %v627_v1 }
  0xb6   :  { %v111_v14 = vpack.c.bf16 %v418_v13, %v417_v12 }
  0xb8   :  { %448 = vmatmul.mubr.msk.bf16.vlgmr.msra.gmra.mxu0 %vm120_vm4, %v111_v14 }
  0xb9   :  { %463 = vmatprep.mubr.msk.bf16.mxu0 %vm628_vm0, %v627_v1  ;;  %460 = vmatpush3.bf16.msra.mxu0 %v492_v18 }
  0xba   :  { %461 = vmatprep.subr.bf16.mxu0 %v627_v1 }
  0xbd   :  { %462 = vmatpush3.bf16.msra.mxu0 %v493_v20 }
  0xfc   :  { %v220_v15 = vpop.f32.mrf.mxu1 }
  0xfe   :  { %v457_v16 = vpop.f32.mrf.mxu1 }
 0x100   :  { %v223_v17 = vpop.f32.mrf.mxu1 }
 0x102   :  { %v458_v19 = vpop.f32.mrf.mxu1 }
 0x178   :  { %v158_v21 = vpop.f32.mrf.mxu0 }
 0x179   :  { %v221_v22 = vadd.f32 %v220_v15, %v158_v21 }
 0x17a   :  { %v449_v24 = vpop.f32.mrf.mxu0 }
 0x17b   :  { %v234_v25 = vadd.f32 %v425_v23, %v221_v22 }
 0x17c   :  { %v161_v26 = vpop.f32.mrf.mxu0 }
 0x17d   :  { %v224_v27 = vadd.f32 %v223_v17, %v161_v26  ;;  %496 = vtanh.f32 %v234_v25 }
 0x17e   :  { %v450_v28 = vpop.f32.mrf.mxu0 }
 0x17f   :  { %v235_v29 = vadd.f32 %v425_v23, %v224_v27 }
 0x181   :  { %498 = vtanh.f32 %v235_v29 }
 0x18a   :  { %v497_v30 = vpop.eup %496 }
 0x18e   :  { %v499_v31 = vpop.eup %498 }
 0x18f   :  { %v238_v32 = vpack.c.bf16 %v499_v31, %v497_v30 }
 0x191   :  { %464 = vmatmul.mubr.msk.bf16.vlgmr.msra.gmra.mxu0 %vm182_vm1, %v238_v32 }
 0x251   :  { %v299_v36 = vpop.f32.mrf.mxu0 }
 0x252   :  { %v300_v37 = vadd.f32 %v426_v35, %v299_v36 }
 0x253   :  { %v465_v38 = vpop.f32.mrf.mxu0 }
 0x254   :  { %500 = vtanh.f32 %v300_v37 }
 0x255   :  { %v302_v39 = vpop.f32.mrf.mxu0 }
 0x256   :  { %v303_v40 = vadd.f32 %v426_v35, %v302_v39 }
 0x257   :  { %v466_v41 = vpop.f32.mrf.mxu0 }
 0x258   :  { %502 = vtanh.f32 %v303_v40 }
 0x261   :  { %v501_v42 = vpop.eup %500 }
 0x265   :  { %v503_v43 = vpop.eup %502 }
 0x266   :  { %v308_v44 = vpack.c.bf16 %v503_v43, %v501_v42 }
 0x268   :  { %472 = vmatmul.mubr.msk.bf16.vlgmr.msra.gmra.mxu1 %vm182_vm1, %v308_v44 }
 0x328   :  { %v369_v46 = vpop.f32.mrf.mxu1 }
 0x329   :  { %v370_v47 = vadd.f32 %v430_v45, %v369_v46 }
 0x32a   :  { %v473_v48 = vpop.f32.mrf.mxu1 }
 0x32b   :  { %376 = vmax.xlane.f32.xlu1 %v370_v47 }
 0x32c   :  { %v372_v49 = vpop.f32.mrf.mxu1 }
 0x32d   :  { %v373_v50 = vadd.f32 %v430_v45, %v372_v49 }
 0x32e   :  { %v474_v51 = vpop.f32.mrf.mxu1 }
 0x32f   :  { %378 = vmax.xlane.f32.xlu1 %v373_v50 }
 0x3b4   :  { %v377_v52 = vpop.xlane.xlu1 %376 }
 0x3b5   :  { %v380_v53 = vsub.f32 %v370_v47, %v377_v52 }
 0x3b7   :  { %v382_v54 = vmul.f32 1.442695, %v380_v53 }
 0x3b8   :  { %v379_v55 = vpop.xlane.xlu1 %378 }
 0x3b9   :  { %504 = vpow2.f32 %v382_v54  ;;  %v381_v56 = vsub.f32 %v373_v50, %v379_v55 }
 0x3bb   :  { %v384_v57 = vmul.f32 1.442695, %v381_v56 }
 0x3bd   :  { %506 = vpow2.f32 %v384_v57 }
 0x3c6   :  { %v505_v58 = vpop.eup %504 }
 0x3c7   :  { %386 = vadd.xlane.f32.xlu0 %v505_v58 }
 0x3ca   :  { %v507_v59 = vpop.eup %506 }
 0x3cb   :  { %388 = vadd.xlane.f32.xlu1 %v507_v59 }
 0x450   :  { %v387_v60 = vpop.xlane.xlu0 %386 }
 0x451   :  { %508 = vrcp.f32 %v387_v60 }
 0x454   :  { %v389_v61 = vpop.xlane.xlu1 %388 }
 0x455   :  { %510 = vrcp.f32 %v389_v61 }
 0x45e   :  { %v509_v62 = vpop.eup %508 }
 0x45f   :  { %v394_v63 = vmul.f32 %v509_v62, %v505_v58 }
 0x461   :  { %396 = vst [vmem:[#allocation10] sm:$0xff] %v394_v63 }
 0x462   :  { %v511_v0 = vpop.eup %510 }
 0x463   :  { %v395_v1 = vmul.f32 %v511_v0, %v507_v59 }
 0x465   :  { %397 = vst [vmem:[#allocation10 + $0x8] sm:$0xff] %v395_v1 }
 0x466   :  { %603 = shalt.err (!%p600_p10)
}
 0x467   :  { %s630_s18 = smov 128   ;;  %s631_s19 = smov 8  }
 0x468   :  { %409 = dma.vmem_to_hbm [thread:$0]  %s404_s8, 256, %s746_s9, [#allocation4], %s630_s18, %s630_s18, %s631_s19  }
 0x469   :  { %618 = dma.done.wait [#allocation4], 256  }
 0x46a   :  { %619 = vsyncadd [#allocation4], 4294967040 }
 0x46b   :  { %413 = vsyncpa [#allocation3], 1 }
 0x46c   :  { %414 = vsyncpa [#allocation6], 1 }
 0x46d   :  { %415 = vsyncpa [#allocation9], 1 }
 0x46e   :  { %416 = vsyncpa [#allocation4], 1 }

// kernel: tpu_custom_call.1
= control target key start
LH: loop header
LB: loop body
LE: loop exit
PB: predicated region body
PF: predicated region fallthrough
CT: control target
= control target key end

     0   :  { %14 = vsyncpa [#allocation3], 0  ;;  %s737_s0 = inlined_call_operand.hbm [shape: bf16[16,32], index: 0, kind: input, shape index: {}]   ;;  %s738_s1 = inlined_call_operand.vmem [shape: s32[16,1], index: 1, kind: input, shape index: {}]   ;;  %s739_s2 = inlined_call_operand.vmem [shape: bf16[32,32], index: 2, kind: input, shape index: {}]   ;;  %s740_s3 = inlined_call_operand.hbm [shape: bf16[16,32], index: 3, kind: input, shape index: {}]   ;;  %s741_s4 = inlined_call_operand.vmem [shape: f32[1,32], index: 4, kind: input, shape index: {}]   ;;  %s742_s5 = inlined_call_operand.hbm [shape: bf16[32,32], index: 5, kind: input, shape index: {}]   ;;  %s743_s6 = inlined_call_operand.vmem [shape: f32[1,32], index: 6, kind: input, shape index: {}]   ;;  %s744_s7 = inlined_call_operand.hbm [shape: bf16[32,128], index: 7, kind: input, shape index: {}]   ;;  %s745_s8 = inlined_call_operand.vmem [shape: f32[1,128], index: 8, kind: input, shape index: {}]   ;;  %s746_s9 = inlined_call_operand.hbm [shape: f32[16,128], index: 9, kind: output, shape index: {}]  }
   0x1   :  { %15 = vsyncpa [#allocation6], 0 }
   0x2   :  { %16 = vsyncpa [#allocation9], 0 }
   0x3   :  { %17 = vsyncpa [#allocation4], 0  ;;  %s620_s30 = smov [#allocation5]   ;;  %s621_s11 = smov [#allocation2]  }
   0x4   :  { %s39_s10 = sshll.u32 %s620_s30, 4  ;;  %s23_s12 = sshll.u32 %s621_s11, 4  ;;  %s40_s10 = int_to_ptr.vmem [resolvable:$true] %s39_s10  ;;  %s24_s12 = int_to_ptr.vmem [resolvable:$true] %s23_s12 }
   0x5   :  { %s520_s13 = scalar_lea.vmem %s40_s10, 128  ;;  %p525_p1 = scmp.lt.s32.totalorder %s40_s10, %s40_s10 }
   0x6   :  { %p521_p0 = scmp.ne.s32.totalorder %s40_s10, %s520_s13  ;;  %p526_p2 = scmp.lt.s32.totalorder %s520_s13, %s520_s13 }
   0x8   :  { %p527_p3 = por %p526_p2, %p525_p1 }
   0xa   :  { %p528_p4 = pnand %p527_p3, %p521_p0 }
   0xc   :  { %531 = shalt.err (!%p528_p4)
}
   0xd   :  { %s622_s14 = smov 64   ;;  %s623_s15 = smov 4  }
   0xe   :  { %45 = dma.hbm_to_vmem [thread:$0]  %s740_s3, 128, %s40_s10, [#allocation6], %s622_s14, %s622_s14, %s623_s15  }
   0xf   :  { %s540_s18 = scalar_lea.vmem %s24_s12, 128  ;;  %p545_p6 = scmp.lt.s32.totalorder %s24_s12, %s24_s12 }
  0x10   :  { %p541_p5 = scmp.ne.s32.totalorder %s24_s12, %s540_s18  ;;  %p546_p7 = scmp.lt.s32.totalorder %s540_s18, %s540_s18 }
  0x12   :  { %p547_p8 = por %p546_p7, %p545_p6 }
  0x14   :  { %p548_p9 = pnand %p547_p8, %p541_p5 }
  0x16   :  { %551 = shalt.err (!%p548_p9)
}
  0x17   :  { %29 = dma.hbm_to_vmem [thread:$0]  %s737_s0, 128, %s24_s12, [#allocation3], %s622_s14, %s622_s14, %s623_s15  }
  0x18   :  { %s624_s21 = smov [#allocation7]   ;;  %s625_s23 = smov [#allocation8]  }
  0x19   :  { %s53_s22 = sshll.u32 %s624_s21, 4  ;;  %s67_s24 = sshll.u32 %s625_s23, 4  ;;  %s54_s22 = int_to_ptr.vmem [resolvable:$true] %s53_s22  ;;  %s68_s24 = int_to_ptr.vmem [resolvable:$true] %s67_s24 }
  0x1a   :  { %s560_s3 = scalar_lea.vmem %s54_s22, 256  ;;  %p565_p11 = scmp.lt.s32.totalorder %s54_s22, %s54_s22 }
  0x1b   :  { %p561_p10 = scmp.ne.s32.totalorder %s54_s22, %s560_s3  ;;  %p566_p12 = scmp.lt.s32.totalorder %s560_s3, %s560_s3 }
  0x1d   :  { %p567_p13 = por %p566_p12, %p565_p11 }
  0x1f   :  { %p568_p0 = pnand %p567_p13, %p561_p10 }
  0x21   :  { %571 = shalt.err (!%p568_p0)
}
  0x22   :  { %59 = dma.hbm_to_vmem [thread:$0]  %s742_s5, 256, %s54_s22, [#allocation6], %s622_s14, %s622_s14, %s623_s15  }
  0x23   :  { %s580_s0 = scalar_lea.vmem %s68_s24, 256  ;;  %p585_p2 = scmp.lt.s32.totalorder %s68_s24, %s68_s24 }
  0x24   :  { %p581_p1 = scmp.ne.s32.totalorder %s68_s24, %s580_s0  ;;  %p586_p3 = scmp.lt.s32.totalorder %s580_s0, %s580_s0 }
  0x26   :  { %p587_p4 = por %p586_p3, %p585_p2 }
  0x28   :  { %p588_p5 = pnand %p587_p4, %p581_p1 }
  0x2a   :  { %591 = shalt.err (!%p588_p5)
}
  0x2b   :  { %73 = dma.hbm_to_vmem [thread:$0]  %s744_s7, 256, %s68_s24, [#allocation9], %s622_s14, %s622_s14, %s623_s15  }
  0x2c   :  { %612 = dma.done.wait [#allocation3], 128  }
  0x2d   :  { %613 = vsyncadd [#allocation3], 4294967168 }
  0x2e   :  { %614 = dma.done.wait [#allocation6], 384  }
  0x2f   :  { %615 = vsyncadd [#allocation6], 4294966912 }
  0x30   :  { %616 = dma.done.wait [#allocation9], 256  }
  0x31   :  { %617 = vsyncadd [#allocation9], 4294967040  ;;  %v626_v0 = vmov 0   ;;  %v627_v1 = vmov 0.0   ;;  %vm628_vm0 = vmmov 0   ;;  %v95_v2 = vld [vmem:[%s738_s1] sm:$0xff]  ;;  %v97_v8 = vlaneseq }
  0x32   :  { %487 = vset.pattern.permute.xlu0 %v626_v0  ;;  %451 = vmatprep.subr.bf16.mxu1 %v627_v1  ;;  %v488_v3 = vld [vmem:[%s739_s2 + $0x8] sm:$0xff]   ;;  %v489_v5 = vld [vmem:[%s739_s2] sm:$0xff]   ;;  %vm182_vm1 = vcmask 261120   ;;  %vm120_vm4 = vcmask 130048   ;;  %v492_v18 = vld [vmem:[#allocation7 + $0x8] sm:$0xff]  }
  0x33   :  { %445 = vmatprep.subr.bf16.mxu0 %v627_v1  ;;  %455 = vmatprep.mubr.msk.bf16.mxu1 %vm628_vm0, %v627_v1  ;;  %v96_v4 = vld [vmem:[%s738_s1 + $0x8] sm:$0xff]  ;;  %v490_v6 = vld [vmem:[#allocation2] sm:$0xff]   ;;  %v98_v9 = vand.u32 127, %v97_v8  ;;  %v493_v20 = vld [vmem:[#allocation7] sm:$0xff]  }
  0x34   :  { %447 = vmatprep.mubr.msk.bf16.mxu0 %vm628_vm0, %v627_v1  ;;  %100 = vperm.xlu0 %487, %v95_v2   ;;  %v491_v7 = vld [vmem:[#allocation5] sm:$0xff]   ;;  %v425_v23 = vld [vmem:[%s741_s4] ss:$0 sm:$0xff] }
  0x35   :  { %452 = vmatpush3.bf16.msra.mxu1 %v488_v3  ;;  %446 = vmatpush3.bf16.msra.mxu0 %v491_v7  ;;  %v494_v33 = vld [vmem:[#allocation8 + $0x8] sm:$0xff]   ;;  %v495_v34 = vld [vmem:[#allocation8] sm:$0xff]  }
  0x36   :  { %453 = vmatprep.subr.bf16.mxu1 %v627_v1  ;;  %459 = vmatprep.subr.bf16.mxu0 %v627_v1  ;;  %v426_v35 = vld [vmem:[%s743_s6] ss:$0 sm:$0xff]  ;;  %s629_s6 = smov [#allocation10]  }
  0x37   :  { %v430_v45 = vld [vmem:[%s745_s8] ss:$0 sm:$0xff]  ;;  %s403_s8 = sshll.u32 %s629_s6, 4  ;;  %s404_s8 = int_to_ptr.vmem [resolvable:$true] %s403_s8 }
  0x38   :  { %103 = vperm.xlu0 %487, %v96_v4   ;;  %s592_s17 = scalar_lea.vmem %s404_s8, 256  ;;  %p597_p7 = scmp.lt.s32.totalorder %s404_s8, %s404_s8 }
  0x39   :  { %454 = vmatpush3.bf16.msra.mxu1 %v489_v5  ;;  %p593_p6 = scmp.ne.s32.totalorder %s404_s8, %s592_s17  ;;  %p598_p8 = scmp.lt.s32.totalorder %s592_s17, %s592_s17 }
  0x3a   :  { %467 = vmatprep.subr.bf16.mxu1 %v627_v1 }
  0x3b   :  { %p599_p9 = por %p598_p8, %p597_p7 }
  0x3c   :  { %456 = vmatmul.mubr.msk.bf16.vlgmr.msra.gmra.mxu1 %vm182_vm1, %v490_v6 }
  0x3d   :  { %471 = vmatprep.mubr.msk.bf16.mxu1 %vm628_vm0, %v627_v1  ;;  %468 = vmatpush3.bf16.msra.mxu1 %v494_v33  ;;  %p600_p10 = pnand %p599_p9, %p593_p6 }
  0x3e   :  { %469 = vmatprep.subr.bf16.mxu1 %v627_v1 }
  0x41   :  { %470 = vmatpush3.bf16.msra.mxu1 %v495_v34 }
  0xaf   :  { %v101_v10 = vpop.permute.xlu0 %100 }
  0xb0   :  { %vm105_vm2 = vcmp.eq.s32.totalorder %v98_v9, %v101_v10 }
  0xb1   :  { %v417_v12 = vsel %vm105_vm2, 1.0, %v627_v1 }
  0xb3   :  { %v104_v11 = vpop.permute.xlu0 %103 }
  0xb4   :  { %vm106_vm3 = vcmp.eq.s32.totalorder %v98_v9, %v104_v11 }
  0xb5   :  { %v418_v13 = vsel %vm106_vm3, 1.0, %v627_v1 }
  0xb6   :  { %v111_v14 = vpack.c.bf16 %v418_v13, %v417_v12 }
  0xb8   :  { %448 = vmatmul.mubr.msk.bf16.vlgmr.msra.gmra.mxu0 %vm120_vm4, %v111_v14 }
  0xb9   :  { %463 = vmatprep.mubr.msk.bf16.mxu0 %vm628_vm0, %v627_v1  ;;  %460 = vmatpush3.bf16.msra.mxu0 %v492_v18 }
  0xba   :  { %461 = vmatprep.subr.bf16.mxu0 %v627_v1 }
  0xbd   :  { %462 = vmatpush3.bf16.msra.mxu0 %v493_v20 }
  0xfc   :  { %v220_v15 = vpop.f32.mrf.mxu1 }
  0xfe   :  { %v457_v16 = vpop.f32.mrf.mxu1 }
 0x100   :  { %v223_v17 = vpop.f32.mrf.mxu1 }
 0x102   :  { %v458_v19 = vpop.f32.mrf.mxu1 }
 0x178   :  { %v158_v21 = vpop.f32.mrf.mxu0 }
 0x179   :  { %v221_v22 = vadd.f32 %v220_v15, %v158_v21 }
 0x17a   :  { %v449_v24 = vpop.f32.mrf.mxu0 }
 0x17b   :  { %v234_v25 = vadd.f32 %v425_v23, %v221_v22 }
 0x17c   :  { %v161_v26 = vpop.f32.mrf.mxu0 }
 0x17d   :  { %v224_v27 = vadd.f32 %v223_v17, %v161_v26  ;;  %496 = vtanh.f32 %v234_v25 }
 0x17e   :  { %v450_v28 = vpop.f32.mrf.mxu0 }
 0x17f   :  { %v235_v29 = vadd.f32 %v425_v23, %v224_v27 }
 0x181   :  { %498 = vtanh.f32 %v235_v29 }
 0x18a   :  { %v497_v30 = vpop.eup %496 }
 0x18e   :  { %v499_v31 = vpop.eup %498 }
 0x18f   :  { %v238_v32 = vpack.c.bf16 %v499_v31, %v497_v30 }
 0x191   :  { %464 = vmatmul.mubr.msk.bf16.vlgmr.msra.gmra.mxu0 %vm182_vm1, %v238_v32 }
 0x251   :  { %v299_v36 = vpop.f32.mrf.mxu0 }
 0x252   :  { %v300_v37 = vadd.f32 %v426_v35, %v299_v36 }
 0x253   :  { %v465_v38 = vpop.f32.mrf.mxu0 }
 0x254   :  { %500 = vtanh.f32 %v300_v37 }
 0x255   :  { %v302_v39 = vpop.f32.mrf.mxu0 }
 0x256   :  { %v303_v40 = vadd.f32 %v426_v35, %v302_v39 }
 0x257   :  { %v466_v41 = vpop.f32.mrf.mxu0 }
 0x258   :  { %502 = vtanh.f32 %v303_v40 }
 0x261   :  { %v501_v42 = vpop.eup %500 }
 0x265   :  { %v503_v43 = vpop.eup %502 }
 0x266   :  { %v308_v44 = vpack.c.bf16 %v503_v43, %v501_v42 }
 0x268   :  { %472 = vmatmul.mubr.msk.bf16.vlgmr.msra.gmra.mxu1 %vm182_vm1, %v308_v44 }
 0x328   :  { %v369_v46 = vpop.f32.mrf.mxu1 }
 0x329   :  { %v370_v47 = vadd.f32 %v430_v45, %v369_v46 }
 0x32a   :  { %v473_v48 = vpop.f32.mrf.mxu1 }
 0x32b   :  { %376 = vmax.xlane.f32.xlu1 %v370_v47 }
 0x32c   :  { %v372_v49 = vpop.f32.mrf.mxu1 }
 0x32d   :  { %v373_v50 = vadd.f32 %v430_v45, %v372_v49 }
 0x32e   :  { %v474_v51 = vpop.f32.mrf.mxu1 }
 0x32f   :  { %378 = vmax.xlane.f32.xlu1 %v373_v50 }
 0x3b4   :  { %v377_v52 = vpop.xlane.xlu1 %376 }
 0x3b5   :  { %v380_v53 = vsub.f32 %v370_v47, %v377_v52 }
 0x3b7   :  { %v382_v54 = vmul.f32 1.442695, %v380_v53 }
 0x3b8   :  { %v379_v55 = vpop.xlane.xlu1 %378 }
 0x3b9   :  { %504 = vpow2.f32 %v382_v54  ;;  %v381_v56 = vsub.f32 %v373_v50, %v379_v55 }
 0x3bb   :  { %v384_v57 = vmul.f32 1.442695, %v381_v56 }
 0x3bd   :  { %506 = vpow2.f32 %v384_v57 }
 0x3c6   :  { %v505_v58 = vpop.eup %504 }
 0x3c7   :  { %386 = vadd.xlane.f32.xlu0 %v505_v58 }
 0x3ca   :  { %v507_v59 = vpop.eup %506 }
 0x3cb   :  { %388 = vadd.xlane.f32.xlu1 %v507_v59 }
 0x450   :  { %v387_v60 = vpop.xlane.xlu0 %386 }
 0x451   :  { %508 = vrcp.f32 %v387_v60 }
 0x454   :  { %v389_v61 = vpop.xlane.xlu1 %388 }
 0x455   :  { %510 = vrcp.f32 %v389_v61 }
 0x45e   :  { %v509_v62 = vpop.eup %508 }
 0x45f   :  { %v394_v63 = vmul.f32 %v509_v62, %v505_v58 }
 0x461   :  { %396 = vst [vmem:[#allocation10] sm:$0xff] %v394_v63 }
 0x462   :  { %v511_v0 = vpop.eup %510 }
 0x463   :  { %v395_v1 = vmul.f32 %v511_v0, %v507_v59 }
 0x465   :  { %397 = vst [vmem:[#allocation10 + $0x8] sm:$0xff] %v395_v1 }
 0x466   :  { %603 = shalt.err (!%p600_p10)
}
 0x467   :  { %s630_s18 = smov 128   ;;  %s631_s19 = smov 8  }
 0x468   :  { %409 = dma.vmem_to_hbm [thread:$0]  %s404_s8, 256, %s746_s9, [#allocation4], %s630_s18, %s630_s18, %s631_s19  }
 0x469   :  { %618 = dma.done.wait [#allocation4], 256  }
 0x46a   :  { %619 = vsyncadd [#allocation4], 4294967040 }
 0x46b   :  { %413 = vsyncpa [#allocation3], 1 }
 0x46c   :  { %414 = vsyncpa [#allocation6], 1 }
 0x46d   :  { %415 = vsyncpa [#allocation9], 1 }
 0x46e   :  { %416 = vsyncpa [#allocation4], 1 }

</bundles_post_ra>
